<compile_context>
chip_gen: v6e
topology: v6e:2x2x1
jax: 0.10.0
libtpu: 0.0.40
codegen_flags: <defaults>
</compile_context>

<pallas_src>
import functools

import jax
import jax.numpy as jnp
from jax import lax
from jax.experimental import pallas as pl
from jax.experimental.pallas import tpu as pltpu

LEAK = 0.2
EPS = 1e-5


def _conv_lrelu_stats_kernel(x_ref, w_ref, b_ref, vm_ref, y_ref, stats_ref, xs_ref,
                             *, k, Cin, Wp, P):
    """Conv (single K=Cin*k*k MXU matmul) + LeakyReLU + per-image BN partial stats.

    x_ref:     (1, Cin, Hp*Wp + k - 1) bf16  row-major-flattened (padded) image
    w_ref:     (Cp, k*k*Cin)           bf16  weights, taps folded into contraction
    b_ref:     (Cp, 1)                 f32   conv bias
    vm_ref:    (1, P)                  f32   valid-column mask (precomputed, hoisted)
    y_ref:     (1, Cp, P)              bf16  post-LeakyReLU activations
    stats_ref: (1, Cp, 2)              f32   [:,0]=sum, [:,1]=sum of squares (valid)
    xs_ref:    (k*k*Cin, P)            bf16  staged shifted slices (VMEM scratch)
    """
    # Stage the k*k shifted views of the flattened image: k*k small VMEM copies
    # instead of k*k tiny-K matmuls each paying MXU fill/drain + accumulator RMW.
    for t in range(k * k):
        off = (t // k) * Wp + (t % k)
        xs_ref[t * Cin:(t + 1) * Cin, :] = x_ref[0, :, off:off + P]

    # One MXU push, contraction K = Cin*k*k; f32 accumulation stays in registers.
    y = jnp.dot(w_ref[...], xs_ref[...], preferred_element_type=jnp.float32)
    y = y + b_ref[...]                              # conv bias
    y = jnp.where(y >= 0.0, y, LEAK * y)            # LeakyReLU(0.2)
    y_ref[0] = y.astype(y_ref.dtype)                # bf16 writeback

    # Partial BN statistics over valid columns only (row-wrap columns masked out).
    yv = y * vm_ref[...]
    s = jnp.sum(yv, axis=1, keepdims=True)          # (Cp, 1)
    sq = jnp.sum(y * yv, axis=1, keepdims=True)     # (Cp, 1)
    stats_ref[0] = jnp.concatenate([s, sq], axis=1)


@functools.partial(jax.jit, static_argnames=("k", "stride", "padding"))
def basic_forward(x, w, b, gamma, beta, *, k=3, stride=1, padding=0):
    """Fused Conv2d -> LeakyReLU(0.2) -> BatchNorm2d (training-mode batch stats)."""
    if stride != 1:
        # TODO(synk): stride > 1 and the transpose=True (ConvTranspose2d) branch of
        # Basic are not implemented in this fused kernel.
        raise NotImplementedError("only stride=1, transpose=False is implemented")

    N, Cin, H, W0 = x.shape
    Cout = w.shape[0]
    if padding > 0:
        x = jnp.pad(x, ((0, 0), (0, 0), (padding, padding), (padding, padding)))
    Hp, Wp = H + 2 * padding, W0 + 2 * padding
    Hout, Wout = Hp - k + 1, Wp - k + 1
    P = Hout * Wp                       # full-width output positions (incl. wrap cols)
    HWp = Hp * Wp + (k - 1)             # flattened length + tail pad for the last tap
    Cp = ((Cout + 7) // 8) * 8          # sublane-multiple channel pad only (not 128)
    KKC = k * k * Cin

    # ---- cheap prep (no im2col, no activation transposes) ----
    x_flat = x.reshape(N, Cin, Hp * Wp)
    x_flat = jnp.pad(x_flat, ((0, 0), (0, 0), (0, k - 1))).astype(jnp.bfloat16)
    # w_fold[c, t*Cin + ci] = w[c, ci, i, j] with t = i*k + j  (matches staging order)
    w_fold = jnp.transpose(w, (0, 2, 3, 1)).reshape(Cout, KKC)
    w_fold = jnp.pad(w_fold, ((0, Cp - Cout), (0, 0))).astype(jnp.bfloat16)
    b_p = jnp.pad(b, (0, Cp - Cout)).astype(jnp.float32).reshape(Cp, 1)
    vmask = ((jnp.arange(P, dtype=jnp.int32) % Wp) < Wout).astype(jnp.float32)
    vmask = vmask.reshape(1, P)

    # ---- phase 1: conv + LeakyReLU + per-image partial stats (Pallas) ----
    y, stats = pl.pallas_call(
        functools.partial(_conv_lrelu_stats_kernel, k=k, Cin=Cin, Wp=Wp, P=P),
        grid=(N,),
        in_specs=[
            pl.BlockSpec((1, Cin, HWp), lambda n: (n, 0, 0)),
            pl.BlockSpec((Cp, KKC), lambda n: (0, 0)),
            pl.BlockSpec((Cp, 1), lambda n: (0, 0)),
            pl.BlockSpec((1, P), lambda n: (0, 0)),
        ],
        out_specs=[
            pl.BlockSpec((1, Cp, P), lambda n: (n, 0, 0)),
            pl.BlockSpec((1, Cp, 2), lambda n: (n, 0, 0)),
        ],
        out_shape=[
            jax.ShapeDtypeStruct((N, Cp, P), jnp.bfloat16),
            jax.ShapeDtypeStruct((N, Cp, 2), jnp.float32),
        ],
        scratch_shapes=[pltpu.VMEM((KKC, P), jnp.bfloat16)],
        compiler_params=pltpu.CompilerParams(
            dimension_semantics=("parallel",),
            vmem_limit_bytes=32 * 1024 * 1024,
        ),
        cost_estimate=pl.CostEstimate(
            flops=2 * N * Cp * P * KKC,
            transcendentals=0,
            bytes_accessed=(x_flat.size * 2 + w_fold.size * 2 + b_p.size * 4
                            + vmask.size * 4 + N * Cp * P * 2 + N * Cp * 2 * 4),
        ),
    )(x_flat, w_fold, b_p, vmask)

    # ---- tiny cross-batch stats reduction -> per-channel scale/shift ----
    count = jnp.float32(N * Hout * Wout)
    tot = jnp.sum(stats[:, :Cout, :], axis=0)          # (Cout, 2)
    mean = tot[:, 0] / count
    var = tot[:, 1] / count - mean * mean              # biased variance (training mode)
    inv = lax.rsqrt(var + EPS)
    scale = gamma.astype(jnp.float32) * inv
    shift = beta.astype(jnp.float32) - mean * scale
    # TODO(synk): running_mean / running_var are not tracked (training-mode forward only).

    # ---- normalize + valid-region slice in ONE fused XLA pass ----
    # (per perf review: avoids a second pallas_call that writes a full padded slab
    #  which the wrapper would immediately re-read and slice)
    y_valid = y.reshape(N, Cp, Hout, Wp)[:, :Cout, :, :Wout].astype(jnp.float32)
    return y_valid * scale[None, :, None, None] + shift[None, :, None, None]


def basic_forward_reference(x, w, b, gamma, beta, *, stride=1, padding=0):
    """Pure-JAX f32 reference mirroring the PyTorch module."""
    pad = ((padding, padding), (padding, padding))
    y = lax.conv_general_dilated(
        x, w, window_strides=(stride, stride), padding=pad,
        dimension_numbers=("NCHW", "OIHW", "NCHW"),
    ) + b[None, :, None, None]
    y = jnp.where(y >= 0.0, y, LEAK * y)
    mean = jnp.mean(y, axis=(0, 2, 3), keepdims=True)
    var = jnp.mean(jnp.square(y - mean), axis=(0, 2, 3), keepdims=True)
    return (gamma[None, :, None, None] * (y - mean) * lax.rsqrt(var + EPS)
            + beta[None, :, None, None])


if __name__ == "__main__":
    # Basic(input=4, output=8, k_size=3, stride=1, padding=0, transpose=False)
    N, Cin, H, W = 2, 4, 16, 16
    Cout, k, stride, padding = 8, 3, 1, 0

    key = jax.random.PRNGKey(0)
    kx, kw, kb = jax.random.split(key, 3)
    x = jax.random.normal(kx, (N, Cin, H, W), dtype=jnp.float32)

    fan_in = Cin * k * k
    bound = 1.0 / (fan_in ** 0.5)  # PyTorch-style uniform init
    w = jax.random.uniform(kw, (Cout, Cin, k, k), minval=-bound, maxval=bound,
                           dtype=jnp.float32)
    b = jax.random.uniform(kb, (Cout,), minval=-bound, maxval=bound,
                           dtype=jnp.float32)
    gamma = jnp.ones((Cout,), dtype=jnp.float32)   # BatchNorm2d affine init
    beta = jnp.zeros((Cout,), dtype=jnp.float32)

    out = basic_forward(x, w, b, gamma, beta, k=k, stride=stride, padding=padding)
    out = jax.block_until_ready(out)

    ref = basic_forward_reference(x, w, b, gamma, beta, stride=stride,
                                  padding=padding)
    assert out.shape == (N, Cout, H - k + 1, W - k + 1), out.shape
    # Loose tolerance: MXU operands and the stored activation are bf16 (f32
    # accumulation/statistics); real bugs give O(1) errors.
    err = float(jnp.max(jnp.abs(out - ref)))
    assert jnp.allclose(out, ref, atol=5e-2, rtol=5e-2), err
    print("KERNEL_OK")
</pallas_src>

<mosaic_0001>
module attributes {stable_mosaic.version = 11 : i64} {
  func.func @_conv_lrelu_stats_kernel(%arg0: i32, %arg1: memref<1x4x258xbf16, #tpu.memory_space<vmem>>, %arg2: memref<8x36xbf16, #tpu.memory_space<vmem>>, %arg3: memref<8x1xf32, #tpu.memory_space<vmem>>, %arg4: memref<1x224xf32, #tpu.memory_space<vmem>>, %arg5: memref<1x8x224xbf16, #tpu.memory_space<vmem>>, %arg6: memref<1x8x2xf32, #tpu.memory_space<vmem>>, %arg7: memref<36x224xbf16, #tpu.memory_space<vmem>>) attributes {dimension_semantics = [#tpu.dimension_semantics<parallel>], iteration_bounds = array<i64: 2>, scalar_prefetch = 0 : i64, scratch_operands = 1 : i64, tpu.core_type = #tpu.core_type<tc>, window_params = [{transform_indices = @transform_0, window_bounds = array<i64: 1, 4, 258>}, {pipeline_mode = #tpu.pipeline_mode<synchronous>, transform_indices = @transform_1, window_bounds = array<i64: 8, 36>}, {pipeline_mode = #tpu.pipeline_mode<synchronous>, transform_indices = @transform_2, window_bounds = array<i64: 8, 1>}, {pipeline_mode = #tpu.pipeline_mode<synchronous>, transform_indices = @transform_3, window_bounds = array<i64: 1, 224>}, {transform_indices = @transform_4, window_bounds = array<i64: 1, 8, 224>}, {transform_indices = @transform_5, window_bounds = array<i64: 1, 8, 2>}]} {
    %c0 = arith.constant 0 : index
    %c0_0 = arith.constant 0 : index
    %c0_1 = arith.constant 0 : index
    %0 = vector.load %arg1[%c0, %c0_0, %c0_1] : memref<1x4x258xbf16, #tpu.memory_space<vmem>>, vector<1x4x224xbf16>
    %1 = vector.shape_cast %0 : vector<1x4x224xbf16> to vector<4x224xbf16>
    %c0_2 = arith.constant 0 : index
    %c0_3 = arith.constant 0 : index
    %2 = vector.load %arg7[%c0_2, %c0_3] : memref<36x224xbf16, #tpu.memory_space<vmem>>, vector<4x224xbf16>
    tpu.vector_store %arg7[%c0_2, %c0_3], %1 {strides = array<i32>} : memref<36x224xbf16, #tpu.memory_space<vmem>>, vector<4x224xbf16>,
    %c0_4 = arith.constant 0 : index
    %c0_5 = arith.constant 0 : index
    %c1 = arith.constant 1 : index
    %3 = vector.load %arg1[%c0_4, %c0_5, %c1] : memref<1x4x258xbf16, #tpu.memory_space<vmem>>, vector<1x4x224xbf16>
    %4 = vector.shape_cast %3 : vector<1x4x224xbf16> to vector<4x224xbf16>
    %c4 = arith.constant 4 : index
    %c0_6 = arith.constant 0 : index
    %5 = vector.load %arg7[%c4, %c0_6] : memref<36x224xbf16, #tpu.memory_space<vmem>>, vector<4x224xbf16>
    tpu.vector_store %arg7[%c4, %c0_6], %4 {strides = array<i32>} : memref<36x224xbf16, #tpu.memory_space<vmem>>, vector<4x224xbf16>,
    %c0_7 = arith.constant 0 : index
    %c0_8 = arith.constant 0 : index
    %c2 = arith.constant 2 : index
    %6 = vector.load %arg1[%c0_7, %c0_8, %c2] : memref<1x4x258xbf16, #tpu.memory_space<vmem>>, vector<1x4x224xbf16>
    %7 = vector.shape_cast %6 : vector<1x4x224xbf16> to vector<4x224xbf16>
    %c8 = arith.constant 8 : index
    %c0_9 = arith.constant 0 : index
    %8 = vector.load %arg7[%c8, %c0_9] : memref<36x224xbf16, #tpu.memory_space<vmem>>, vector<4x224xbf16>
    tpu.vector_store %arg7[%c8, %c0_9], %7 {strides = array<i32>} : memref<36x224xbf16, #tpu.memory_space<vmem>>, vector<4x224xbf16>,
    %c0_10 = arith.constant 0 : index
    %c0_11 = arith.constant 0 : index
    %c16 = arith.constant 16 : index
    %9 = vector.load %arg1[%c0_10, %c0_11, %c16] : memref<1x4x258xbf16, #tpu.memory_space<vmem>>, vector<1x4x224xbf16>
    %10 = vector.shape_cast %9 : vector<1x4x224xbf16> to vector<4x224xbf16>
    %c12 = arith.constant 12 : index
    %c0_12 = arith.constant 0 : index
    %11 = vector.load %arg7[%c12, %c0_12] : memref<36x224xbf16, #tpu.memory_space<vmem>>, vector<4x224xbf16>
    tpu.vector_store %arg7[%c12, %c0_12], %10 {strides = array<i32>} : memref<36x224xbf16, #tpu.memory_space<vmem>>, vector<4x224xbf16>,
    %c0_13 = arith.constant 0 : index
    %c0_14 = arith.constant 0 : index
    %c17 = arith.constant 17 : index
    %12 = vector.load %arg1[%c0_13, %c0_14, %c17] : memref<1x4x258xbf16, #tpu.memory_space<vmem>>, vector<1x4x224xbf16>
    %13 = vector.shape_cast %12 : vector<1x4x224xbf16> to vector<4x224xbf16>
    %c16_15 = arith.constant 16 : index
    %c0_16 = arith.constant 0 : index
    %14 = vector.load %arg7[%c16_15, %c0_16] : memref<36x224xbf16, #tpu.memory_space<vmem>>, vector<4x224xbf16>
    tpu.vector_store %arg7[%c16_15, %c0_16], %13 {strides = array<i32>} : memref<36x224xbf16, #tpu.memory_space<vmem>>, vector<4x224xbf16>,
    %c0_17 = arith.constant 0 : index
    %c0_18 = arith.constant 0 : index
    %c18 = arith.constant 18 : index
    %15 = vector.load %arg1[%c0_17, %c0_18, %c18] : memref<1x4x258xbf16, #tpu.memory_space<vmem>>, vector<1x4x224xbf16>
    %16 = vector.shape_cast %15 : vector<1x4x224xbf16> to vector<4x224xbf16>
    %c20 = arith.constant 20 : index
    %c0_19 = arith.constant 0 : index
    %17 = vector.load %arg7[%c20, %c0_19] : memref<36x224xbf16, #tpu.memory_space<vmem>>, vector<4x224xbf16>
    tpu.vector_store %arg7[%c20, %c0_19], %16 {strides = array<i32>} : memref<36x224xbf16, #tpu.memory_space<vmem>>, vector<4x224xbf16>,
    %c0_20 = arith.constant 0 : index
    %c0_21 = arith.constant 0 : index
    %c32 = arith.constant 32 : index
    %18 = vector.load %arg1[%c0_20, %c0_21, %c32] : memref<1x4x258xbf16, #tpu.memory_space<vmem>>, vector<1x4x224xbf16>
    %19 = vector.shape_cast %18 : vector<1x4x224xbf16> to vector<4x224xbf16>
    %c24 = arith.constant 24 : index
    %c0_22 = arith.constant 0 : index
    %20 = vector.load %arg7[%c24, %c0_22] : memref<36x224xbf16, #tpu.memory_space<vmem>>, vector<4x224xbf16>
    tpu.vector_store %arg7[%c24, %c0_22], %19 {strides = array<i32>} : memref<36x224xbf16, #tpu.memory_space<vmem>>, vector<4x224xbf16>,
    %c0_23 = arith.constant 0 : index
    %c0_24 = arith.constant 0 : index
    %c33 = arith.constant 33 : index
    %21 = vector.load %arg1[%c0_23, %c0_24, %c33] : memref<1x4x258xbf16, #tpu.memory_space<vmem>>, vector<1x4x224xbf16>
    %22 = vector.shape_cast %21 : vector<1x4x224xbf16> to vector<4x224xbf16>
    %c28 = arith.constant 28 : index
    %c0_25 = arith.constant 0 : index
    %23 = vector.load %arg7[%c28, %c0_25] : memref<36x224xbf16, #tpu.memory_space<vmem>>, vector<4x224xbf16>
    tpu.vector_store %arg7[%c28, %c0_25], %22 {strides = array<i32>} : memref<36x224xbf16, #tpu.memory_space<vmem>>, vector<4x224xbf16>,
    %c0_26 = arith.constant 0 : index
    %c0_27 = arith.constant 0 : index
    %c34 = arith.constant 34 : index
    %24 = vector.load %arg1[%c0_26, %c0_27, %c34] : memref<1x4x258xbf16, #tpu.memory_space<vmem>>, vector<1x4x224xbf16>
    %25 = vector.shape_cast %24 : vector<1x4x224xbf16> to vector<4x224xbf16>
    %c32_28 = arith.constant 32 : index
    %c0_29 = arith.constant 0 : index
    %26 = vector.load %arg7[%c32_28, %c0_29] : memref<36x224xbf16, #tpu.memory_space<vmem>>, vector<4x224xbf16>
    tpu.vector_store %arg7[%c32_28, %c0_29], %25 {strides = array<i32>} : memref<36x224xbf16, #tpu.memory_space<vmem>>, vector<4x224xbf16>,
    %c0_30 = arith.constant 0 : index
    %c0_31 = arith.constant 0 : index
    %27 = vector.load %arg2[%c0_30, %c0_31] : memref<8x36xbf16, #tpu.memory_space<vmem>>, vector<8x36xbf16>
    %c0_32 = arith.constant 0 : index
    %c0_33 = arith.constant 0 : index
    %28 = vector.load %arg7[%c0_32, %c0_33] : memref<36x224xbf16, #tpu.memory_space<vmem>>, vector<36x224xbf16>
    %cst = arith.constant dense<0.000000e+00> : vector<8x224xf32>
    %29 = tpu.matmul %27, %28, %cst {dimension_numbers = #tpu.dot_dimension_numbers<[1], [0], [0], [1], [0, 0, 1, 1], [], []>} : vector<8x36xbf16>, vector<36x224xbf16>, vector<8x224xf32> -> vector<8x224xf32>
    %c0_34 = arith.constant 0 : index
    %c0_35 = arith.constant 0 : index
    %30 = vector.load %arg3[%c0_34, %c0_35] : memref<8x1xf32, #tpu.memory_space<vmem>>, vector<8x1xf32>
    %31 = vector.broadcast %30 : vector<8x1xf32> to vector<8x224xf32>
    %32 = arith.addf %29, %31 : vector<8x224xf32>
    %cst_36 = arith.constant 0.000000e+00 : f32
    %33 = vector.broadcast %cst_36 : f32 to vector<8x224xf32>
    %34 = arith.cmpf oge, %32, %33 : vector<8x224xf32>
    %cst_37 = arith.constant 2.000000e-01 : f32
    %35 = vector.broadcast %cst_37 : f32 to vector<8x224xf32>
    %36 = arith.mulf %35, %32 : vector<8x224xf32>
    %37 = arith.select %34, %32, %36 : vector<8x224xi1>, vector<8x224xf32>
    %38 = arith.truncf %37 : vector<8x224xf32> to vector<8x224xbf16>
    %c0_38 = arith.constant 0 : index
    %c0_39 = arith.constant 0 : index
    %c0_40 = arith.constant 0 : index
    %39 = vector.load %arg5[%c0_38, %c0_39, %c0_40] : memref<1x8x224xbf16, #tpu.memory_space<vmem>>, vector<1x8x224xbf16>
    %40 = vector.shape_cast %39 : vector<1x8x224xbf16> to vector<8x224xbf16>
    %41 = vector.shape_cast %38 : vector<8x224xbf16> to vector<1x8x224xbf16>
    tpu.vector_store %arg5[%c0_38, %c0_39, %c0_40], %41 {strides = array<i32>} : memref<1x8x224xbf16, #tpu.memory_space<vmem>>, vector<1x8x224xbf16>,
    %c0_41 = arith.constant 0 : index
    %c0_42 = arith.constant 0 : index
    %42 = vector.load %arg4[%c0_41, %c0_42] : memref<1x224xf32, #tpu.memory_space<vmem>>, vector<1x224xf32>
    %43 = vector.broadcast %42 : vector<1x224xf32> to vector<8x224xf32>
    %44 = arith.mulf %37, %43 : vector<8x224xf32>
    %cst_43 = arith.constant dense<0.000000e+00> : vector<8xf32>
    %45 = vector.multi_reduction <add>, %44, %cst_43 [1] : vector<8x224xf32> to vector<8xf32>
    %46 = vector.shape_cast %45 : vector<8xf32> to vector<8x1xf32>
    %47 = arith.mulf %37, %44 : vector<8x224xf32>
    %cst_44 = arith.constant dense<0.000000e+00> : vector<8xf32>
    %48 = vector.multi_reduction <add>, %47, %cst_44 [1] : vector<8x224xf32> to vector<8xf32>
    %49 = vector.shape_cast %48 : vector<8xf32> to vector<8x1xf32>
    %50 = tpu.concatenate %46, %49 in 1 : vector<8x1xf32>, vector<8x1xf32> -> vector<8x2xf32>
    %c0_45 = arith.constant 0 : index
    %c0_46 = arith.constant 0 : index
    %c0_47 = arith.constant 0 : index
    %51 = vector.load %arg6[%c0_45, %c0_46, %c0_47] : memref<1x8x2xf32, #tpu.memory_space<vmem>>, vector<1x8x2xf32>
    %52 = vector.shape_cast %51 : vector<1x8x2xf32> to vector<8x2xf32>
    %53 = vector.shape_cast %50 : vector<8x2xf32> to vector<1x8x2xf32>
    tpu.vector_store %arg6[%c0_45, %c0_46, %c0_47], %53 {strides = array<i32>} : memref<1x8x2xf32, #tpu.memory_space<vmem>>, vector<1x8x2xf32>,
    return
  }
  func.func @transform_0(%arg0: i32) -> (i32, i32, i32) {
    %c0_i32 = arith.constant 0 : i32
    %c0_i32_0 = arith.constant 0 : i32
    %c0_i32_1 = arith.constant 0 : i32
    return %arg0, %c0_i32, %c0_i32_0 : i32, i32, i32
  }
  func.func @transform_1(%arg0: i32) -> (i32, i32) {
    %c0_i32 = arith.constant 0 : i32
    %c0_i32_0 = arith.constant 0 : i32
    %c0_i32_1 = arith.constant 0 : i32
    return %c0_i32, %c0_i32_0 : i32, i32
  }
  func.func @transform_2(%arg0: i32) -> (i32, i32) {
    %c0_i32 = arith.constant 0 : i32
    %c0_i32_0 = arith.constant 0 : i32
    %c0_i32_1 = arith.constant 0 : i32
    return %c0_i32, %c0_i32_0 : i32, i32
  }
  func.func @transform_3(%arg0: i32) -> (i32, i32) {
    %c0_i32 = arith.constant 0 : i32
    %c0_i32_0 = arith.constant 0 : i32
    %c0_i32_1 = arith.constant 0 : i32
    return %c0_i32, %c0_i32_0 : i32, i32
  }
  func.func @transform_4(%arg0: i32) -> (i32, i32, i32) {
    %c0_i32 = arith.constant 0 : i32
    %c0_i32_0 = arith.constant 0 : i32
    %c0_i32_1 = arith.constant 0 : i32
    return %arg0, %c0_i32, %c0_i32_0 : i32, i32, i32
  }
  func.func @transform_5(%arg0: i32) -> (i32, i32, i32) {
    %c0_i32 = arith.constant 0 : i32
    %c0_i32_0 = arith.constant 0 : i32
    %c0_i32_1 = arith.constant 0 : i32
    return %arg0, %c0_i32, %c0_i32_0 : i32, i32, i32
  }
}

</mosaic_0001>

<bundles_post_ra>
// kernel: basic_forward.1
= control target key start
LH: loop header
LB: loop body
LE: loop exit
PB: predicated region body
PF: predicated region fallthrough
CT: control target
= control target key end

     0   :  { %s738_s18 = smov 0   ;;  %s811_s0 = inlined_call_operand.vmem [shape: bf16[2,4,258], index: 0, kind: input, shape index: {}]   ;;  %s812_s1 = inlined_call_operand.vmem [shape: bf16[8,36], index: 1, kind: input, shape index: {}]   ;;  %s813_s2 = inlined_call_operand.vmem [shape: f32[8,1], index: 2, kind: input, shape index: {}]   ;;  %s814_s3 = inlined_call_operand.vmem [shape: f32[1,224], index: 3, kind: input, shape index: {}]   ;;  %s815_s4 = inlined_call_operand.vmem [shape: bf16[2,8,224], index: 4, kind: output, shape index: {0}]   ;;  %s816_s5 = inlined_call_operand.vmem [shape: f32[2,8,2], index: 5, kind: output, shape index: {1}]  }
   0x1 LB: > { %s631_s19 = sadd.s32 4294967295, %s696_s18   ;;  %p635_p0 = scmp.ge.s32.totalorder %s696_s18, 1  ;;  %s696_s18 = sphi %s738_s18, %s16_s18  }
   0x2   : > { %p190_p1 = scmp.lt.s32.totalorder %s696_s18, 3 }
   0x4   : > { %p191_p2 = pnand %p635_p0, %p190_p1 }
   0x5   : > { %p222_p3 = scmp.lt.s32.totalorder (!%p191_p2), %s631_s19, 1  ;;  %s699_s24 = smov (!%p191_p2), 94  }
   0x6   : > { %194 = sbr.rel (%p191_p2) target bundleno = 514 (0x202), region = 36  ;;  %s700_s25 = smov (!%p191_p2), 95  }
   0x7   : > { %s701_s26 = smov (!%p191_p2), 110   ;;  %s702_s27 = smov (!%p191_p2), 111  }
   0x8   : > { %s703_s28 = smov (!%p191_p2), 96   ;;  %s704_s29 = smov (!%p191_p2), 127  }
   0x9   : > { %s705_s30 = smov (!%p191_p2), 126   ;;  %s706_s6 = smov (!%p191_p2), 112  }
   0xb   : > { %v257_v0 = vlaneseq  ;;  %v698_v1 = vmov 1983009808   ;;  %s822_s19 = smov (!%p222_p3, %s631_s19), 1  ;;  %vm247_vm0 = vcmask 1041408   ;;  %vm248_vm1 = vcmask 783364   ;;  %v416_v23 = vld [vmem:[%s813_s2] sm:$0xff] }
   0xc   : > { %v255_v2 = vunpack.c.l.s4 %v698_v1  ;;  %s657_s20 = smul.u32 6, %s822_s19  ;;  %vm756_vm2 = vmor %vm248_vm1, %vm247_vm0  ;;  %v707_v22 = vmov 0   ;;  %vm267_vm3 = vcmask 1043458   ;;  %vm268_vm4 = vcmask 785414   ;;  %v410_v63 = vld [vmem:[%s812_s1] sm:$0xf] }
   0xd   : > { %v748_v3 = vshrl.u32 %v257_v0, 7  ;;  %489 = vmatprep.mubr.bf16.mxu0 %v707_v22  ;;  %676 = vset.pattern.permute.xlu0 %v707_v22  ;;  %vm376_vm5 = vcmask 1043456   ;;  %vm406_vm6 = vcmask 769024   ;;  %vm378_vm7 = vcmask 777216   ;;  %vm765_vm8 = vmor %vm268_vm4, %vm267_vm3  ;;  %s655_s13 = sshll.u32 %s822_s19, 3 }
   0xe   : > { %v256_v4 = vunpack.c.0.s8 %v255_v2  ;;  %s226_s23 = scalar_lea.vmem %s811_s0, %s657_s20  ;;  %vm333_vm9 = vcmask 900096   ;;  %vm316_vm10 = vcmask 908288   ;;  %vm349_vm11 = vcmask 785408   ;;  %s231_s16 = scalar_lea.vmem %s815_s4, %s655_s13 }
   0xf   : > { %v382_v6 = vld [vmem:[%s226_s23] sm:$0x3f]  ;;  %vm264_vm12 = vcmask 1039360   ;;  %vm283_vm13 = vcmask 1031168   ;;  %vm300_vm14 = vcmask 916480   ;;  %vm447_vm15 = vcmask 293888   ;;  %s235_s20 = scalar_lea.vmem %s816_s5, %s655_s13 }
  0x10   : > { %v259_v5 = vsub.s32 %v256_v4, %v748_v3  ;;  %v353_v7 = vld [vmem:[%s226_s23] sm:$0x3f]  ;;  %v384_v9 = vcombine.high %v382_v6, %v382_v6  ;;  %v520_v1 = vsub.s32 0, %v748_v3  ;;  %vm513_vm1 = vcmask 785412  }
  0x11   : > { %v355_v11 = vcombine.low %v353_v7, %v353_v7  ;;  %v642_v12 = vld.sshfl [vmem:[%s226_s23] sm:$0x33 pattern:$0x76325410]  ;;  %vm514_vm3 = vmor %vm513_vm1, %vm376_vm5  ;;  %vm541_vm4 = vcmask 7168  }
  0x12   : > { %v391_v8 = vrot.slane %v382_v6, %v259_v5  ;;  %v369_v10 = vrot.slane %v353_v7, %v259_v5  ;;  %250 = vst.msk [vmem:[#allocation2] sm:$0x33] %vm756_vm2, %v642_v12  ;;  %v398_v14 = vrot.slane %v384_v9, %v259_v5  ;;  %v679_v16 = vld [vmem:[%s226_s23] ss:$0 sps:$4 sm:$0xff]  }
  0x13   : > { %v362_v15 = vrot.slane %v355_v11, %v259_v5  ;;  %v329_v17 = vrot.slane %v679_v16, %v259_v5  ;;  %v680_v18 = vld [vmem:[%s226_s23] ss:$0 sps:$4 sm:$0xff]  }
  0x14   : > { %399 = vrot.lane.b32.xlu0 %v391_v8, %s699_s24  ;;  %372 = vrot.lane.b32.xlu1 %v369_v10, %s700_s25  ;;  %v260_v19 = vrot.slane %v680_v18, %v259_v5  ;;  %v681_v20 = vld [vmem:[%s226_s23] ss:$0 sps:$4 sm:$0xff]  }
  0x15   : > { %v296_v21 = vrot.slane %v681_v20, %v259_v5  ;;  %v516_v4 = vld [vmem:[%s814_s3] sm:$0x3]  ;;  %v524_v5 = vsub.s32 1, %v748_v3 }
  0x16   : > { %v521_v10 = vrot.slane %v516_v4, %v520_v1 }
  0x18   : > { %401 = vrot.lane.b32.xlu0 %v398_v14, %s699_s24  ;;  %370 = vrot.lane.b32.xlu1 %v362_v15, %s700_s25 }
  0x1c   : > { %330 = vrot.lane.b32.xlu1 %v329_v17, %s701_s26  ;;  %313 = vrot.lane.b32.xlu0 %v642_v12, %s702_s27 }
  0x20   : > { %346 = vrot.lane.b32.xlu0 %v642_v12, %s703_s28  ;;  %261 = vrot.lane.b32.xlu1 %v260_v19, %s704_s29 }
  0x24   : > { %280 = vrot.lane.b32.xlu0 %v642_v12, %s705_s30  ;;  %297 = vrot.lane.b32.xlu1 %v296_v21, %s706_s6  ;;  %v525_v12 = vrot.slane %v516_v4, %v524_v5 }
  0x28   : > { %419 = vperm.xlu0 %676, %v416_v23  }
  0x86   : > { %v400_v24 = vpop.permute.xlu0 %399  ;;  %v373_v25 = vpop.permute.xlu1 %372 }
  0x87   : > { %v403_v28 = vrot.slane %v400_v24, 4  ;;  %v375_v29 = vrot.slane %v373_v25, 4 }
  0x8a   : > { %v402_v26 = vpop.permute.xlu0 %401  ;;  %v371_v27 = vpop.permute.xlu1 %370 }
  0x8b   : > { %v404_v30 = vrot.slane %v402_v26, 4  ;;  %v374_v31 = vrot.slane %v371_v27, 4 }
  0x8d   : > { %v405_v33 = vsel %vm376_vm5, %v403_v28, %v404_v30  ;;  %v377_v34 = vsel %vm376_vm5, %v374_v31, %v375_v29  ;;  %vm543_vm5 = vcmask 15360  }
  0x8e   : > { %v407_v35 = vsel %vm406_vm6, %v400_v24, %v405_v33  ;;  %v379_v36 = vsel %vm378_vm7, %v371_v27, %v377_v34  ;;  %v331_v37 = vpop.permute.xlu1 %330  ;;  %v314_v38 = vpop.permute.xlu0 %313 }
  0x8f   : > { %381 = vst.msk [vmem:[#allocation2 + $0x18] sm:$0xcc] %vm765_vm8, %v379_v36  ;;  %v332_v39 = vrot.slane %v331_v37, 4  ;;  %v315_v40 = vrot.slane %v314_v38, 4 }
  0x90   : > { %409 = vst.msk [vmem:[#allocation2 + $0x20] sm:$0x33] %vm756_vm2, %v407_v35 }
  0x91   : > { %v334_v41 = vsel %vm333_vm9, %v331_v37, %v332_v39  ;;  %v317_v42 = vsel %vm316_vm10, %v314_v38, %v315_v40 }
  0x92   : > { %336 = vst.msk [vmem:[#allocation2 + $0x10] sm:$0xcc] %vm765_vm8, %v334_v41  ;;  %v347_v43 = vpop.permute.xlu0 %346  ;;  %v262_v44 = vpop.permute.xlu1 %261 }
  0x93   : > { %319 = vst.msk [vmem:[#allocation2 + $0x10] sm:$0x33] %vm756_vm2, %v317_v42  ;;  %v348_v45 = vrot.slane %v347_v43, 4  ;;  %v263_v46 = vrot.slane %v262_v44, 4 }
  0x95   : > { %v350_v47 = vsel %vm349_vm11, %v347_v43, %v348_v45  ;;  %v265_v48 = vsel %vm264_vm12, %v262_v44, %v263_v46 }
  0x96   : > { %270 = vst.msk [vmem:[#allocation2] sm:$0xcc] %vm765_vm8, %v265_v48  ;;  %v281_v49 = vpop.permute.xlu0 %280  ;;  %v298_v50 = vpop.permute.xlu1 %297 }
  0x97   : > { %352 = vst.msk [vmem:[#allocation2 + $0x18] sm:$0x33] %vm756_vm2, %v350_v47  ;;  %v415_v51 = vld [vmem:[#allocation2 + $0x20] sm:$0x33]  ;;  %v282_v52 = vrot.slane %v281_v49, 4  ;;  %v299_v53 = vrot.slane %v298_v50, 4 }
  0x98   : > { %v649_v54 = vcombine.high %v415_v51, %v415_v51  ;;  %v648_v55 = vcombine.low %v415_v51, %v415_v51 }
  0x99   : > { %v284_v56 = vsel %vm283_vm13, %v281_v49, %v282_v52  ;;  %v301_v57 = vsel %vm300_vm14, %v298_v50, %v299_v53 }
  0x9a   : > { %650 = vmatprep.subr.msk.bf16.mxu0 %vm247_vm0, %v649_v54  ;;  %v452_v58 = vsel %vm247_vm0, %v648_v55, 0  ;;  %303 = vst.msk [vmem:[#allocation2 + $0x8] sm:$0xcc] %vm765_vm8, %v301_v57 }
  0x9b   : > { %286 = vst.msk [vmem:[#allocation2 + $0x8] sm:$0x33] %vm756_vm2, %v284_v56  ;;  %468 = vmatpush1.bf16.msra.mxu0 %v452_v58 }
  0x9e   : > { %v684_v59 = vld [vmem:[#allocation2 + $0x14] ss:$8 sps:$4 sm:$0xff]   ;;  %v686_v60 = vld [vmem:[#allocation2 + $0x10] ss:$8 sps:$4 sm:$0xff]  }
  0x9f   : > { %469 = vmatprep.subr.bf16.mxu0 %v684_v59 }
  0xa0   : > { %470 = vmatpush1.bf16.msra.mxu0 %v686_v60 }
  0xa2   : > { %v687_v61 = vld [vmem:[#allocation2 + $0x4] ss:$8 sps:$4 sm:$0xff]   ;;  %v689_v62 = vld [vmem:[#allocation2] ss:$8 sps:$4 sm:$0xff]  }
  0xa3   : > { %471 = vmatprep.subr.bf16.mxu0 %v687_v61  ;;  %v420_v0 = vpop.permute.xlu0 %419 }
  0xa4   : > { %472 = vmatpush1.bf16.msra.mxu0 %v689_v62 }
  0xa7   : > { %651 = vmatmul.mubr.msk.bf16.vlgmr.msra.gmra.mxu0 %vm447_vm15, %v410_v63 }
 0x167   : > { %v491_v2 = vpop.f32.mrf.mxu0 }
 0x168   : > { %v492_v6 = vadd.f32 %v491_v2, %v420_v0 }
 0x169   : > { %v493_v7 = vpop.f32.mrf.mxu0 }
 0x16a   : > { %vm498_vm0 = vcmp.ge.f32.partialorder %v492_v6, 0.0  ;;  %v500_v8 = vmul.f32 0.2, %v492_v6  ;;  %v494_v9 = vadd.f32 %v493_v7, %v420_v0 }
 0x16b   : > { %v495_v11 = vpop.f32.mrf.mxu0 }
 0x16c   : > { %v502_v13 = vsel %vm498_vm0, %v492_v6, %v500_v8  ;;  %vm499_vm2 = vcmp.ge.f32.partialorder %v494_v9, 0.0  ;;  %v501_v14 = vmul.f32 0.2, %v494_v9 }
 0x16d   : > { %v496_v15 = vpop.f32.mrf.mxu0  ;;  %v528_v17 = vmul.f32 %v521_v10, %v502_v13 }
 0x16e   : > { %v503_v16 = vsel %vm499_vm2, %v494_v9, %v501_v14 }
 0x16f   : > { %v656_v3 = vpack.c.bf16 %v503_v16, %v502_v13  ;;  %v529_v18 = vmul.f32 %v525_v12, %v503_v16  ;;  %v535_v22 = vmul.f32 %v528_v17, %v502_v13 }
 0x171   : > { %v531_v19 = vsel %vm349_vm11, %v529_v18, 0.0  ;;  %v536_v20 = vmul.f32 %v529_v18, %v503_v16  ;;  %515 = vst.msk [vmem:[%s231_s16] sm:$0xff] %vm514_vm3, %v656_v3 }
 0x172   : > { %v532_v21 = vadd.f32 %v531_v19, %v528_v17 }
 0x173   : > { %v537_v23 = vsel %vm349_vm11, %v536_v20, 0.0 }
 0x174   : > { %533 = vadd.xlane.f32.xlu1 %v532_v21  ;;  %v538_v24 = vadd.f32 %v537_v23, %v535_v22 }
 0x176   : > { %539 = vadd.xlane.f32.xlu0 %v538_v24 }
 0x1fd   : > { %v534_v25 = vpop.xlane.xlu1 %533 }
 0x1ff   : > { %v540_v26 = vpop.xlane.xlu0 %539 }
 0x200   : > { %v542_v27 = vsel %vm541_vm4, %v534_v25, %v540_v26 }
 0x201   : > { %544 = vst.msk [vmem:[%s235_s20] sm:$0xff] %vm543_vm5, %v542_v27 }
 0x202 PF: > { %s16_s18 = sadd.s32 1, %s696_s18  }
 0x203   : > { %p13_p4 = scmp.ge.s32.totalorder %s16_s18, 4  }
 0x205   :  { %15 = sbr.rel (!%p13_p4) target bundleno = 1 (0x1), region = 78 }

</bundles_post_ra>
